<compile_context>
chip_gen: v7x
topology: tpu7x:2x2x1
jax: 0.10.0
libtpu: 0.0.40
codegen_flags: <defaults>
</compile_context>

<pallas_src>
import jax
import jax.numpy as jnp
from jax import lax
from jax.experimental import pallas as pl
from jax.experimental.pallas import tpu as pltpu

K = 4          # conv kernel size
S = 2          # stride
P = 1          # padding
EPS = 1e-5     # InstanceNorm2d default eps

_VMEM_TILE_BUDGET = 40 * 1024 * 1024   # bytes allowed for (double-buffered) tiles
_VMEM_LIMIT = 48 * 1024 * 1024         # explicit scoped-VMEM limit (< v7x 64 MiB)


def _round_up(x, m):
    return (x + m - 1) // m * m


# ---------------------------------------------------------------------------
# glue: im2col (patch extraction) for the down conv, plain JAX
# ---------------------------------------------------------------------------
def _im2col(x_nhwc, k, s, p):
    """x: (N,H,W,C) -> patches (N, OH, OW, k*k*C), channel ordering (kh, kw, c)."""
    n, h, w, c = x_nhwc.shape
    xp = jnp.pad(x_nhwc, ((0, 0), (p, p), (p, p), (0, 0)))
    oh = (h + 2 * p - k) // s + 1
    ow = (w + 2 * p - k) // s + 1
    hi = (jnp.arange(oh) * s)[:, None] + jnp.arange(k)[None, :]   # (OH, k)
    wi = (jnp.arange(ow) * s)[:, None] + jnp.arange(k)[None, :]   # (OW, k)
    g = xp[:, hi]              # (N, OH, k, Wp, C)
    g = g[:, :, :, wi]         # (N, OH, k, OW, k, C)
    g = jnp.transpose(g, (0, 1, 3, 2, 4, 5))                      # (N, OH, OW, kh, kw, C)
    return g.reshape(n, oh, ow, k * k * c)


# ---------------------------------------------------------------------------
# down kernel: (row-tile of im2col patches) @ W  + fused ReLU (the uprelu)
# ---------------------------------------------------------------------------
def _down_kernel(p_ref, w_ref, o_ref):
    d = jnp.dot(p_ref[...], w_ref[...], preferred_element_type=jnp.float32)
    o_ref[...] = jnp.maximum(d, 0.0)


def _pick_row_tile(m_rows, kc, cout):
    """Largest row tile whose double-buffered in/out tiles + resident weight fit."""
    best = 8
    for tm in (2048, 1024, 512, 256, 128, 64, 32, 16, 8):
        need = 4 * (2 * tm * kc + kc * cout + 2 * tm * cout)   # f32 bytes
        if need <= _VMEM_TILE_BUDGET:
            best = tm
            break
    return min(best, _round_up(m_rows, 8))


def _down_conv(patches, w_mat):
    """patches: (M, K*K*Cin) f32; w_mat: (K*K*Cin, inner_nc) -> ReLU(patches @ w)."""
    m, kc = patches.shape
    cout = w_mat.shape[1]
    tm = _pick_row_tile(m, kc, cout)
    mp = _round_up(m, tm)
    if mp != m:
        patches = jnp.pad(patches, ((0, mp - m), (0, 0)))
    out = pl.pallas_call(
        _down_kernel,
        out_shape=jax.ShapeDtypeStruct((mp, cout), jnp.float32),
        grid=(mp // tm,),
        in_specs=[pl.BlockSpec((tm, kc), lambda i: (i, 0)),
                  pl.BlockSpec((kc, cout), lambda i: (0, 0))],   # weight resident
        out_specs=pl.BlockSpec((tm, cout), lambda i: (i, 0)),
        compiler_params=pltpu.CompilerParams(
            dimension_semantics=("parallel",),
            vmem_limit_bytes=_VMEM_LIMIT),
        cost_estimate=pl.CostEstimate(
            flops=2 * mp * kc * cout,
            transcendentals=0,
            bytes_accessed=4 * (mp * kc + kc * cout + mp * cout)),
    )(patches, w_mat)
    return out[:m]


# ---------------------------------------------------------------------------
# up kernel: per sample, 4 parity matmuls (2x2-tap sub-convs of the ConvT)
#            + fused single-pass InstanceNorm2d, lane-dense output (Co, H*W/4)
# ---------------------------------------------------------------------------
def _up_kernel(pp_ref, w_ref, o_ref):
    # pp_ref: (4, 4*Ci, M2)  parity patches of one sample (spatial on lanes)
    # w_ref : (4, Co, 4*Ci)  per-parity weights
    # o_ref : (4, Co, M2)    normalized output, lane-dense over spatial
    n_par, _, m2 = pp_ref.shape
    cout = w_ref.shape[1]
    us = []
    ssum = jnp.zeros((cout, 1), jnp.float32)
    ssq = jnp.zeros((cout, 1), jnp.float32)
    for p in range(n_par):                       # static unroll over the 4 parities
        u = jnp.dot(w_ref[p], pp_ref[p], preferred_element_type=jnp.float32)  # (Co, M2)
        us.append(u)
        ssum = ssum + jnp.sum(u, axis=1, keepdims=True)
        ssq = ssq + jnp.sum(u * u, axis=1, keepdims=True)
    inv_hw = 1.0 / float(n_par * m2)
    mean = ssum * inv_hw
    var = jnp.maximum(ssq * inv_hw - mean * mean, 0.0)
    inv_std = lax.rsqrt(var + EPS)               # EUP path (free slot)
    for p in range(n_par):
        o_ref[p] = (us[p] - mean) * inv_std


def _up_convt_instnorm(d_nhwc, w_up):
    """ConvTranspose2d(k=4,s=2,p=1,bias=False) + InstanceNorm2d via 4 parity sub-convs.

    d_nhwc: (N, OH, OW, Ci);  w_up: (Ci, Co, 4, 4) [IOHW]  ->  (N, Co, 2*OH, 2*OW)
    out[2m+py, 2m'+px] = sum_{a,b in {0,1}} d_pad[m+py+a, m'+px+b] . W[:, :, 3-py-2a, 3-px-2b]
    """
    n, oh, ow, ci = d_nhwc.shape
    co = w_up.shape[1]
    m2 = oh * ow
    dp = jnp.pad(d_nhwc, ((0, 0), (1, 1), (1, 1), (0, 0)))

    pp_list, ww_list = [], []
    for py in range(2):
        for px in range(2):
            taps, wts = [], []
            for a in range(2):
                for b in range(2):
                    win = dp[:, py + a: py + a + oh, px + b: px + b + ow, :]  # (N,OH,OW,Ci)
                    taps.append(jnp.transpose(win, (0, 3, 1, 2)).reshape(n, ci, m2))
                    wts.append(jnp.transpose(w_up[:, :, 3 - py - 2 * a, 3 - px - 2 * b]))
            pp_list.append(jnp.concatenate(taps, axis=1))        # (N, 4*Ci, M2)
            ww_list.append(jnp.concatenate(wts, axis=1))         # (Co, 4*Ci)
    pp = jnp.stack(pp_list, axis=1)                              # (N, 4, 4*Ci, M2)
    ww = jnp.stack(ww_list, axis=0)                              # (4, Co, 4*Ci)

    out = pl.pallas_call(
        _up_kernel,
        out_shape=jax.ShapeDtypeStruct((n, 4, co, m2), jnp.float32),
        grid=(n,),
        in_specs=[pl.BlockSpec((None, 4, 4 * ci, m2), lambda i: (i, 0, 0, 0)),
                  pl.BlockSpec((4, co, 4 * ci), lambda i: (0, 0, 0))],
        out_specs=pl.BlockSpec((None, 4, co, m2), lambda i: (i, 0, 0, 0)),
        compiler_params=pltpu.CompilerParams(
            dimension_semantics=("parallel",),
            vmem_limit_bytes=_VMEM_LIMIT),
        cost_estimate=pl.CostEstimate(
            flops=2 * n * 4 * m2 * (4 * ci) * co,
            transcendentals=0,
            bytes_accessed=4 * (n * 4 * (4 * ci) * m2 + 4 * co * (4 * ci) + n * 4 * co * m2)),
    )(pp, ww)

    # interleave parities: out[n, 2*py+px, co, m*OW+m'] -> (N, Co, 2*OH, 2*OW)
    u = out.reshape(n, 2, 2, co, oh, ow)
    u = jnp.transpose(u, (0, 3, 4, 1, 5, 2)).reshape(n, co, 2 * oh, 2 * ow)
    return u


# ---------------------------------------------------------------------------
# wrapper
# ---------------------------------------------------------------------------
def unet_innermost_forward(x_nchw, w_down, w_up):
    """w_down: (inner_nc, input_nc, 4, 4) [Conv2d OIHW]
       w_up:   (inner_nc, outer_nc, 4, 4) [ConvTranspose2d IOHW]"""
    n, cin, h, w = x_nchw.shape
    inner_nc = w_down.shape[0]
    oh, ow = h // S, w // S

    x_nhwc = jnp.transpose(x_nchw, (0, 2, 3, 1)).astype(jnp.float32)
    # LeakyReLU(0.2) once on the feature map (LeakyReLU(0)=0, so conv zero-padding
    # after activation matches PyTorch semantics).
    x_act = jnp.where(x_nhwc >= 0, x_nhwc, 0.2 * x_nhwc)

    # down: Conv2d(k=4, s=2, p=1, bias=False) as tiled im2col matmul (+ fused ReLU)
    patches1 = _im2col(x_act, K, S, P).reshape(n * oh * ow, K * K * cin)
    wd_mat = jnp.transpose(w_down, (2, 3, 1, 0)).reshape(K * K * cin, inner_nc)
    d = _down_conv(patches1, wd_mat).reshape(n, oh, ow, inner_nc)

    # up: ConvTranspose2d(k=4, s=2, p=1, bias=False) + InstanceNorm2d (parity decomposition)
    u = _up_convt_instnorm(d, w_up)

    # skip connection: cat([x, model(x)], dim=1)
    return jnp.concatenate([x_nchw, u], axis=1)


# ---------------------------------------------------------------------------
# pure-JAX reference (for correctness check)
# ---------------------------------------------------------------------------
def _reference(x, wd, wu):
    h0 = jnp.where(x >= 0, x, 0.2 * x)
    d = lax.conv_general_dilated(h0, wd, (S, S), ((P, P), (P, P)),
                                 dimension_numbers=('NCHW', 'OIHW', 'NCHW'))
    d = jnp.maximum(d, 0.0)
    wf = jnp.transpose(jnp.flip(wu, (2, 3)), (1, 0, 2, 3))     # (outer, inner, 4, 4) OIHW
    u = lax.conv_general_dilated(d, wf, (1, 1), ((K - 1 - P,) * 2, (K - 1 - P,) * 2),
                                 lhs_dilation=(S, S),
                                 dimension_numbers=('NCHW', 'OIHW', 'NCHW'))
    mean = u.mean(axis=(2, 3), keepdims=True)
    var = ((u - mean) ** 2).mean(axis=(2, 3), keepdims=True)
    u = (u - mean) * lax.rsqrt(var + EPS)
    return jnp.concatenate([x, u], axis=1)


if __name__ == "__main__":
    # innermost block: input_nc = outer_nc
    N, outer_nc, inner_nc, H, W = 2, 4, 8, 16, 16

    key = jax.random.PRNGKey(0)
    kx, kd, ku = jax.random.split(key, 3)
    x = jax.random.normal(kx, (N, outer_nc, H, W), jnp.float32)
    w_down = 0.1 * jax.random.normal(kd, (inner_nc, outer_nc, K, K), jnp.float32)
    w_up = 0.1 * jax.random.normal(ku, (inner_nc, outer_nc, K, K), jnp.float32)

    fwd = jax.jit(unet_innermost_forward)
    out = jax.block_until_ready(fwd(x, w_down, w_up))

    ref = jax.block_until_ready(_reference(x, w_down, w_up))
    assert out.shape == (N, 2 * outer_nc, H, W), out.shape
    err = float(jnp.abs(out - ref).max())
    assert jnp.allclose(out, ref, atol=2e-2, rtol=2e-2), err

    print("KERNEL_OK")
</pallas_src>

<mosaic_0001>
module attributes {stable_mosaic.version = 11 : i64} {
  func.func @_down_kernel(%arg0: i32, %arg1: memref<128x64xf32, #tpu.memory_space<vmem>>, %arg2: memref<64x8xf32, #tpu.memory_space<vmem>>, %arg3: memref<128x8xf32, #tpu.memory_space<vmem>>) attributes {dimension_semantics = [#tpu.dimension_semantics<parallel>], iteration_bounds = array<i64: 1>, scalar_prefetch = 0 : i64, scratch_operands = 0 : i64, tpu.core_type = #tpu.core_type<tc>, window_params = [{transform_indices = @transform_0, window_bounds = array<i64: 128, 64>}, {pipeline_mode = #tpu.pipeline_mode<synchronous>, transform_indices = @transform_1, window_bounds = array<i64: 64, 8>}, {transform_indices = @transform_2, window_bounds = array<i64: 128, 8>}]} {
    %c0 = arith.constant 0 : index
    %c0_0 = arith.constant 0 : index
    %0 = vector.load %arg1[%c0, %c0_0] : memref<128x64xf32, #tpu.memory_space<vmem>>, vector<128x64xf32>
    %c0_1 = arith.constant 0 : index
    %c0_2 = arith.constant 0 : index
    %1 = vector.load %arg2[%c0_1, %c0_2] : memref<64x8xf32, #tpu.memory_space<vmem>>, vector<64x8xf32>
    %cst = arith.constant dense<0.000000e+00> : vector<128x8xf32>
    %2 = tpu.matmul %0, %1, %cst {dimension_numbers = #tpu.dot_dimension_numbers<[1], [0], [0], [1], [0, 0, 1, 1], [], []>} : vector<128x64xf32>, vector<64x8xf32>, vector<128x8xf32> -> vector<128x8xf32>
    %cst_3 = arith.constant 0.000000e+00 : f32
    %3 = vector.broadcast %cst_3 : f32 to vector<128x8xf32>
    %4 = arith.maximumf %2, %3 : vector<128x8xf32>
    %c0_4 = arith.constant 0 : index
    %c0_5 = arith.constant 0 : index
    %5 = vector.load %arg3[%c0_4, %c0_5] : memref<128x8xf32, #tpu.memory_space<vmem>>, vector<128x8xf32>
    tpu.vector_store %arg3[%c0_4, %c0_5], %4 {strides = array<i32>} : memref<128x8xf32, #tpu.memory_space<vmem>>, vector<128x8xf32>,
    return
  }
  func.func @transform_0(%arg0: i32) -> (i32, i32) {
    %c0_i32 = arith.constant 0 : i32
    %c0_i32_0 = arith.constant 0 : i32
    return %arg0, %c0_i32 : i32, i32
  }
  func.func @transform_1(%arg0: i32) -> (i32, i32) {
    %c0_i32 = arith.constant 0 : i32
    %c0_i32_0 = arith.constant 0 : i32
    %c0_i32_1 = arith.constant 0 : i32
    return %c0_i32, %c0_i32_0 : i32, i32
  }
  func.func @transform_2(%arg0: i32) -> (i32, i32) {
    %c0_i32 = arith.constant 0 : i32
    %c0_i32_0 = arith.constant 0 : i32
    return %arg0, %c0_i32 : i32, i32
  }
}

module attributes {stable_mosaic.version = 11 : i64} {
  func.func @_up_kernel(%arg0: i32, %arg1: memref<1x4x32x64xf32, #tpu.memory_space<vmem>>, %arg2: memref<4x4x32xf32, #tpu.memory_space<vmem>>, %arg3: memref<1x4x4x64xf32, #tpu.memory_space<vmem>>) attributes {dimension_semantics = [#tpu.dimension_semantics<parallel>], iteration_bounds = array<i64: 2>, scalar_prefetch = 0 : i64, scratch_operands = 0 : i64, tpu.core_type = #tpu.core_type<tc>, window_params = [{transform_indices = @transform_0, window_bounds = array<i64: 1, 4, 32, 64>}, {pipeline_mode = #tpu.pipeline_mode<synchronous>, transform_indices = @transform_1, window_bounds = array<i64: 4, 4, 32>}, {transform_indices = @transform_2, window_bounds = array<i64: 1, 4, 4, 64>}]} {
    %cst = arith.constant 0.000000e+00 : f32
    %0 = vector.broadcast %cst : f32 to vector<4x1xf32>
    %cst_0 = arith.constant 0.000000e+00 : f32
    %1 = vector.broadcast %cst_0 : f32 to vector<4x1xf32>
    %c0 = arith.constant 0 : index
    %c0_1 = arith.constant 0 : index
    %c0_2 = arith.constant 0 : index
    %2 = vector.load %arg2[%c0, %c0_1, %c0_2] : memref<4x4x32xf32, #tpu.memory_space<vmem>>, vector<1x4x32xf32>
    %3 = vector.shape_cast %2 : vector<1x4x32xf32> to vector<4x32xf32>
    %c0_3 = arith.constant 0 : index
    %c0_4 = arith.constant 0 : index
    %c0_5 = arith.constant 0 : index
    %c0_6 = arith.constant 0 : index
    %4 = vector.load %arg1[%c0_3, %c0_4, %c0_5, %c0_6] : memref<1x4x32x64xf32, #tpu.memory_space<vmem>>, vector<1x1x32x64xf32>
    %5 = vector.shape_cast %4 : vector<1x1x32x64xf32> to vector<32x64xf32>
    %cst_7 = arith.constant dense<0.000000e+00> : vector<4x64xf32>
    %6 = tpu.matmul %3, %5, %cst_7 {dimension_numbers = #tpu.dot_dimension_numbers<[1], [0], [0], [1], [0, 0, 1, 1], [], []>} : vector<4x32xf32>, vector<32x64xf32>, vector<4x64xf32> -> vector<4x64xf32>
    %cst_8 = arith.constant dense<0.000000e+00> : vector<4xf32>
    %7 = vector.multi_reduction <add>, %6, %cst_8 [1] : vector<4x64xf32> to vector<4xf32>
    %8 = vector.shape_cast %7 : vector<4xf32> to vector<4x1xf32>
    %9 = arith.addf %0, %8 : vector<4x1xf32>
    %10 = arith.mulf %6, %6 : vector<4x64xf32>
    %cst_9 = arith.constant dense<0.000000e+00> : vector<4xf32>
    %11 = vector.multi_reduction <add>, %10, %cst_9 [1] : vector<4x64xf32> to vector<4xf32>
    %12 = vector.shape_cast %11 : vector<4xf32> to vector<4x1xf32>
    %13 = arith.addf %1, %12 : vector<4x1xf32>
    %c1 = arith.constant 1 : index
    %c0_10 = arith.constant 0 : index
    %c0_11 = arith.constant 0 : index
    %14 = vector.load %arg2[%c1, %c0_10, %c0_11] : memref<4x4x32xf32, #tpu.memory_space<vmem>>, vector<1x4x32xf32>
    %15 = vector.shape_cast %14 : vector<1x4x32xf32> to vector<4x32xf32>
    %c0_12 = arith.constant 0 : index
    %c1_13 = arith.constant 1 : index
    %c0_14 = arith.constant 0 : index
    %c0_15 = arith.constant 0 : index
    %16 = vector.load %arg1[%c0_12, %c1_13, %c0_14, %c0_15] : memref<1x4x32x64xf32, #tpu.memory_space<vmem>>, vector<1x1x32x64xf32>
    %17 = vector.shape_cast %16 : vector<1x1x32x64xf32> to vector<32x64xf32>
    %cst_16 = arith.constant dense<0.000000e+00> : vector<4x64xf32>
    %18 = tpu.matmul %15, %17, %cst_16 {dimension_numbers = #tpu.dot_dimension_numbers<[1], [0], [0], [1], [0, 0, 1, 1], [], []>} : vector<4x32xf32>, vector<32x64xf32>, vector<4x64xf32> -> vector<4x64xf32>
    %cst_17 = arith.constant dense<0.000000e+00> : vector<4xf32>
    %19 = vector.multi_reduction <add>, %18, %cst_17 [1] : vector<4x64xf32> to vector<4xf32>
    %20 = vector.shape_cast %19 : vector<4xf32> to vector<4x1xf32>
    %21 = arith.addf %9, %20 : vector<4x1xf32>
    %22 = arith.mulf %18, %18 : vector<4x64xf32>
    %cst_18 = arith.constant dense<0.000000e+00> : vector<4xf32>
    %23 = vector.multi_reduction <add>, %22, %cst_18 [1] : vector<4x64xf32> to vector<4xf32>
    %24 = vector.shape_cast %23 : vector<4xf32> to vector<4x1xf32>
    %25 = arith.addf %13, %24 : vector<4x1xf32>
    %c2 = arith.constant 2 : index
    %c0_19 = arith.constant 0 : index
    %c0_20 = arith.constant 0 : index
    %26 = vector.load %arg2[%c2, %c0_19, %c0_20] : memref<4x4x32xf32, #tpu.memory_space<vmem>>, vector<1x4x32xf32>
    %27 = vector.shape_cast %26 : vector<1x4x32xf32> to vector<4x32xf32>
    %c0_21 = arith.constant 0 : index
    %c2_22 = arith.constant 2 : index
    %c0_23 = arith.constant 0 : index
    %c0_24 = arith.constant 0 : index
    %28 = vector.load %arg1[%c0_21, %c2_22, %c0_23, %c0_24] : memref<1x4x32x64xf32, #tpu.memory_space<vmem>>, vector<1x1x32x64xf32>
    %29 = vector.shape_cast %28 : vector<1x1x32x64xf32> to vector<32x64xf32>
    %cst_25 = arith.constant dense<0.000000e+00> : vector<4x64xf32>
    %30 = tpu.matmul %27, %29, %cst_25 {dimension_numbers = #tpu.dot_dimension_numbers<[1], [0], [0], [1], [0, 0, 1, 1], [], []>} : vector<4x32xf32>, vector<32x64xf32>, vector<4x64xf32> -> vector<4x64xf32>
    %cst_26 = arith.constant dense<0.000000e+00> : vector<4xf32>
    %31 = vector.multi_reduction <add>, %30, %cst_26 [1] : vector<4x64xf32> to vector<4xf32>
    %32 = vector.shape_cast %31 : vector<4xf32> to vector<4x1xf32>
    %33 = arith.addf %21, %32 : vector<4x1xf32>
    %34 = arith.mulf %30, %30 : vector<4x64xf32>
    %cst_27 = arith.constant dense<0.000000e+00> : vector<4xf32>
    %35 = vector.multi_reduction <add>, %34, %cst_27 [1] : vector<4x64xf32> to vector<4xf32>
    %36 = vector.shape_cast %35 : vector<4xf32> to vector<4x1xf32>
    %37 = arith.addf %25, %36 : vector<4x1xf32>
    %c3 = arith.constant 3 : index
    %c0_28 = arith.constant 0 : index
    %c0_29 = arith.constant 0 : index
    %38 = vector.load %arg2[%c3, %c0_28, %c0_29] : memref<4x4x32xf32, #tpu.memory_space<vmem>>, vector<1x4x32xf32>
    %39 = vector.shape_cast %38 : vector<1x4x32xf32> to vector<4x32xf32>
    %c0_30 = arith.constant 0 : index
    %c3_31 = arith.constant 3 : index
    %c0_32 = arith.constant 0 : index
    %c0_33 = arith.constant 0 : index
    %40 = vector.load %arg1[%c0_30, %c3_31, %c0_32, %c0_33] : memref<1x4x32x64xf32, #tpu.memory_space<vmem>>, vector<1x1x32x64xf32>
    %41 = vector.shape_cast %40 : vector<1x1x32x64xf32> to vector<32x64xf32>
    %cst_34 = arith.constant dense<0.000000e+00> : vector<4x64xf32>
    %42 = tpu.matmul %39, %41, %cst_34 {dimension_numbers = #tpu.dot_dimension_numbers<[1], [0], [0], [1], [0, 0, 1, 1], [], []>} : vector<4x32xf32>, vector<32x64xf32>, vector<4x64xf32> -> vector<4x64xf32>
    %cst_35 = arith.constant dense<0.000000e+00> : vector<4xf32>
    %43 = vector.multi_reduction <add>, %42, %cst_35 [1] : vector<4x64xf32> to vector<4xf32>
    %44 = vector.shape_cast %43 : vector<4xf32> to vector<4x1xf32>
    %45 = arith.addf %33, %44 : vector<4x1xf32>
    %46 = arith.mulf %42, %42 : vector<4x64xf32>
    %cst_36 = arith.constant dense<0.000000e+00> : vector<4xf32>
    %47 = vector.multi_reduction <add>, %46, %cst_36 [1] : vector<4x64xf32> to vector<4xf32>
    %48 = vector.shape_cast %47 : vector<4xf32> to vector<4x1xf32>
    %49 = arith.addf %37, %48 : vector<4x1xf32>
    %cst_37 = arith.constant 3.906250e-03 : f32
    %50 = vector.broadcast %cst_37 : f32 to vector<4x1xf32>
    %51 = arith.mulf %45, %50 : vector<4x1xf32>
    %cst_38 = arith.constant 3.906250e-03 : f32
    %52 = vector.broadcast %cst_38 : f32 to vector<4x1xf32>
    %53 = arith.mulf %49, %52 : vector<4x1xf32>
    %54 = arith.mulf %51, %51 : vector<4x1xf32>
    %55 = arith.subf %53, %54 : vector<4x1xf32>
    %cst_39 = arith.constant 0.000000e+00 : f32
    %56 = vector.broadcast %cst_39 : f32 to vector<4x1xf32>
    %57 = arith.maximumf %55, %56 : vector<4x1xf32>
    %cst_40 = arith.constant 9.99999974E-6 : f32
    %58 = vector.broadcast %cst_40 : f32 to vector<4x1xf32>
    %59 = arith.addf %57, %58 : vector<4x1xf32>
    %60 = math.rsqrt %59 : vector<4x1xf32>
    %61 = vector.broadcast %51 : vector<4x1xf32> to vector<4x64xf32>
    %62 = arith.subf %6, %61 : vector<4x64xf32>
    %63 = vector.broadcast %60 : vector<4x1xf32> to vector<4x64xf32>
    %64 = arith.mulf %62, %63 : vector<4x64xf32>
    %c0_41 = arith.constant 0 : index
    %c0_42 = arith.constant 0 : index
    %c0_43 = arith.constant 0 : index
    %c0_44 = arith.constant 0 : index
    %65 = vector.load %arg3[%c0_41, %c0_42, %c0_43, %c0_44] : memref<1x4x4x64xf32, #tpu.memory_space<vmem>>, vector<1x1x4x64xf32>
    %66 = vector.shape_cast %65 : vector<1x1x4x64xf32> to vector<4x64xf32>
    %67 = vector.shape_cast %64 : vector<4x64xf32> to vector<1x1x4x64xf32>
    tpu.vector_store %arg3[%c0_41, %c0_42, %c0_43, %c0_44], %67 {strides = array<i32>} : memref<1x4x4x64xf32, #tpu.memory_space<vmem>>, vector<1x1x4x64xf32>,
    %68 = vector.broadcast %51 : vector<4x1xf32> to vector<4x64xf32>
    %69 = arith.subf %18, %68 : vector<4x64xf32>
    %70 = vector.broadcast %60 : vector<4x1xf32> to vector<4x64xf32>
    %71 = arith.mulf %69, %70 : vector<4x64xf32>
    %c0_45 = arith.constant 0 : index
    %c1_46 = arith.constant 1 : index
    %c0_47 = arith.constant 0 : index
    %c0_48 = arith.constant 0 : index
    %72 = vector.load %arg3[%c0_45, %c1_46, %c0_47, %c0_48] : memref<1x4x4x64xf32, #tpu.memory_space<vmem>>, vector<1x1x4x64xf32>
    %73 = vector.shape_cast %72 : vector<1x1x4x64xf32> to vector<4x64xf32>
    %74 = vector.shape_cast %71 : vector<4x64xf32> to vector<1x1x4x64xf32>
    tpu.vector_store %arg3[%c0_45, %c1_46, %c0_47, %c0_48], %74 {strides = array<i32>} : memref<1x4x4x64xf32, #tpu.memory_space<vmem>>, vector<1x1x4x64xf32>,
    %75 = vector.broadcast %51 : vector<4x1xf32> to vector<4x64xf32>
    %76 = arith.subf %30, %75 : vector<4x64xf32>
    %77 = vector.broadcast %60 : vector<4x1xf32> to vector<4x64xf32>
    %78 = arith.mulf %76, %77 : vector<4x64xf32>
    %c0_49 = arith.constant 0 : index
    %c2_50 = arith.constant 2 : index
    %c0_51 = arith.constant 0 : index
    %c0_52 = arith.constant 0 : index
    %79 = vector.load %arg3[%c0_49, %c2_50, %c0_51, %c0_52] : memref<1x4x4x64xf32, #tpu.memory_space<vmem>>, vector<1x1x4x64xf32>
    %80 = vector.shape_cast %79 : vector<1x1x4x64xf32> to vector<4x64xf32>
    %81 = vector.shape_cast %78 : vector<4x64xf32> to vector<1x1x4x64xf32>
    tpu.vector_store %arg3[%c0_49, %c2_50, %c0_51, %c0_52], %81 {strides = array<i32>} : memref<1x4x4x64xf32, #tpu.memory_space<vmem>>, vector<1x1x4x64xf32>,
    %82 = vector.broadcast %51 : vector<4x1xf32> to vector<4x64xf32>
    %83 = arith.subf %42, %82 : vector<4x64xf32>
    %84 = vector.broadcast %60 : vector<4x1xf32> to vector<4x64xf32>
    %85 = arith.mulf %83, %84 : vector<4x64xf32>
    %c0_53 = arith.constant 0 : index
    %c3_54 = arith.constant 3 : index
    %c0_55 = arith.constant 0 : index
    %c0_56 = arith.constant 0 : index
    %86 = vector.load %arg3[%c0_53, %c3_54, %c0_55, %c0_56] : memref<1x4x4x64xf32, #tpu.memory_space<vmem>>, vector<1x1x4x64xf32>
    %87 = vector.shape_cast %86 : vector<1x1x4x64xf32> to vector<4x64xf32>
    %88 = vector.shape_cast %85 : vector<4x64xf32> to vector<1x1x4x64xf32>
    tpu.vector_store %arg3[%c0_53, %c3_54, %c0_55, %c0_56], %88 {strides = array<i32>} : memref<1x4x4x64xf32, #tpu.memory_space<vmem>>, vector<1x1x4x64xf32>,
    return
  }
  func.func @transform_0(%arg0: i32) -> (i32, i32, i32, i32) {
    %c0_i32 = arith.constant 0 : i32
    %c0_i32_0 = arith.constant 0 : i32
    %c0_i32_1 = arith.constant 0 : i32
    %c0_i32_2 = arith.constant 0 : i32
    return %arg0, %c0_i32, %c0_i32_0, %c0_i32_1 : i32, i32, i32, i32
  }
  func.func @transform_1(%arg0: i32) -> (i32, i32, i32) {
    %c0_i32 = arith.constant 0 : i32
    %c0_i32_0 = arith.constant 0 : i32
    %c0_i32_1 = arith.constant 0 : i32
    %c0_i32_2 = arith.constant 0 : i32
    return %c0_i32, %c0_i32_0, %c0_i32_1 : i32, i32, i32
  }
  func.func @transform_2(%arg0: i32) -> (i32, i32, i32, i32) {
    %c0_i32 = arith.constant 0 : i32
    %c0_i32_0 = arith.constant 0 : i32
    %c0_i32_1 = arith.constant 0 : i32
    %c0_i32_2 = arith.constant 0 : i32
    return %arg0, %c0_i32, %c0_i32_0, %c0_i32_1 : i32, i32, i32, i32
  }
}

</mosaic_0001>

<bundles_post_ra>
// kernel: unet_innermost_forward.2
= control target key start
LH: loop header
LB: loop body
LE: loop exit
PB: predicated region body
PF: predicated region fallthrough
CT: control target
= control target key end

     0   :  { %vm35_vm0 = vcmask 523264   ;;  %vm245_vm1 = vcmask 64512   ;;  %s537_s1 = inlined_call_operand.vmem [shape: f32[64,8], index: 1, kind: input, shape index: {}]   ;;  %s538_s0 = inlined_call_operand.vmem [shape: f32[128,64], index: 0, kind: input, shape index: {}]   ;;  %s539_s2 = inlined_call_operand.vmem [shape: f32[128,8], index: 2, kind: output, shape index: {}]  }
   0x1   :  { %v27_v0 = vld [vmem:[%s537_s1] sm:$0xff]  ;;  %v28_v1 = vld [vmem:[%s537_s1 + $0x8] sm:$0xff]  ;;  %v29_v2 = vld [vmem:[%s537_s1 + $0x10] sm:$0xff] }
   0x2   :  { %v346_v3 = vpack.c.bf16 %v28_v1, %v27_v0  ;;  %v30_v4 = vld [vmem:[%s537_s1 + $0x18] sm:$0xff]  ;;  %v31_v6 = vld [vmem:[%s537_s1 + $0x20] sm:$0xff]  ;;  %v32_v7 = vld [vmem:[%s537_s1 + $0x28] sm:$0xff] }
   0x3   :  { %v350_v5 = vpack.c.bf16 %v30_v4, %v29_v2  ;;  %v11_v8 = vld [vmem:[%s538_s0] sm:$0xff]  ;;  %v354_v10 = vpack.c.bf16 %v32_v7, %v31_v6  ;;  %v33_v11 = vld [vmem:[%s537_s1 + $0x30] sm:$0xff]  ;;  %v34_v12 = vld [vmem:[%s537_s1 + $0x38] sm:$0xff] }
   0x4   :  { %347 = vmatprep.subr.bf16.mxu0 %v346_v3  ;;  %362 = vmatprep.subr.bf16.mxu1 %v346_v3  ;;  %v19_v9 = vld [vmem:[%s538_s0 + $0x40] sm:$0xff]  ;;  %v358_v13 = vpack.c.bf16 %v34_v12, %v33_v11  ;;  %v12_v14 = vld [vmem:[%s538_s0 + $0x8] sm:$0xff]  ;;  %v13_v16 = vld [vmem:[%s538_s0 + $0x10] sm:$0xff] }
   0x5   :  { %349 = vmatpush3.bf16.msra.mxu0 %v346_v3  ;;  %366 = vmatpush3.bf16.msra.mxu1 %v346_v3  ;;  %v20_v15 = vld [vmem:[%s538_s0 + $0x48] sm:$0xff]  ;;  %v21_v17 = vld [vmem:[%s538_s0 + $0x50] sm:$0xff]  ;;  %v14_v18 = vld [vmem:[%s538_s0 + $0x18] sm:$0xff] }
   0x6   :  { %351 = vmatprep.subr.bf16.mxu0 %v350_v5  ;;  %363 = vmatprep.subr.bf16.mxu1 %v350_v5  ;;  %v22_v19 = vld [vmem:[%s538_s0 + $0x58] sm:$0xff]  ;;  %v15_v20 = vld [vmem:[%s538_s0 + $0x20] sm:$0xff]  ;;  %v16_v22 = vld [vmem:[%s538_s0 + $0x28] sm:$0xff] }
   0x7   :  { %322 = vmatprep.mubr.msk.f32.mxu0 %vm35_vm0, %v11_v8  ;;  %334 = vmatprep.mubr.msk.f32.mxu1 %vm35_vm0, %v19_v9  ;;  %v23_v21 = vld [vmem:[%s538_s0 + $0x60] sm:$0xff]  ;;  %v24_v23 = vld [vmem:[%s538_s0 + $0x68] sm:$0xff]  ;;  %v17_v24 = vld [vmem:[%s538_s0 + $0x30] sm:$0xff] }
   0x8   :  { %v25_v25 = vld [vmem:[%s538_s0 + $0x70] sm:$0xff]  ;;  %v18_v26 = vld [vmem:[%s538_s0 + $0x38] sm:$0xff] }
   0x9   :  { %353 = vmatpush3.bf16.msra.mxu0 %v350_v5  ;;  %367 = vmatpush3.bf16.msra.mxu1 %v350_v5  ;;  %v26_v27 = vld [vmem:[%s538_s0 + $0x78] sm:$0xff] }
   0xa   :  { %355 = vmatprep.subr.bf16.mxu0 %v354_v10  ;;  %364 = vmatprep.subr.bf16.mxu1 %v354_v10 }
   0xd   :  { %357 = vmatpush3.bf16.msra.mxu0 %v354_v10  ;;  %368 = vmatpush3.bf16.msra.mxu1 %v354_v10 }
   0xe   :  { %359 = vmatprep.subr.bf16.mxu0 %v358_v13  ;;  %365 = vmatprep.subr.bf16.mxu1 %v358_v13 }
  0x11   :  { %361 = vmatpush3.bf16.msra.mxu0 %v358_v13  ;;  %369 = vmatpush3.bf16.msra.mxu1 %v358_v13 }
  0x14   :  { %323 = vmatmul.mubr.msk.f32.vlgmr.msra.gmra.mrb[0].mxu0 %vm35_vm0, %v12_v14  ;;  %335 = vmatmul.mubr.msk.f32.vlgmr.msra.gmra.mrb[0].mxu1 %vm35_vm0, %v20_v15 }
  0x15   :  { %325 = vmatprep.mubr.msk.f32.mxu0 %vm35_vm0, %v13_v16  ;;  %337 = vmatprep.mubr.msk.f32.mxu1 %vm35_vm0, %v21_v17 }
  0x18   :  { %326 = vmatmul.mubr.msk.f32.gmra.mrb[2].mxu0 %vm35_vm0, %v14_v18  ;;  %338 = vmatmul.mubr.msk.f32.gmra.mrb[2].mxu1 %vm35_vm0, %v22_v19 }
  0x19   :  { %328 = vmatprep.mubr.msk.f32.mxu0 %vm35_vm0, %v15_v20  ;;  %340 = vmatprep.mubr.msk.f32.mxu1 %vm35_vm0, %v23_v21 }
  0x1c   :  { %329 = vmatmul.mubr.msk.f32.gmra.mrb[4].mxu0 %vm35_vm0, %v16_v22  ;;  %341 = vmatmul.mubr.msk.f32.gmra.mrb[4].mxu1 %vm35_vm0, %v24_v23 }
  0x1d   :  { %331 = vmatprep.mubr.msk.f32.mxu0 %vm35_vm0, %v17_v24  ;;  %343 = vmatprep.mubr.msk.f32.mxu1 %vm35_vm0, %v25_v25 }
  0x20   :  { %332 = vmatmul.mubr.msk.f32.gmra.mrb[6].mxu0 %vm35_vm0, %v18_v26  ;;  %344 = vmatmul.mubr.msk.f32.gmra.mrb[6].mxu1 %vm35_vm0, %v26_v27 }
  0xe7   :  { %v324_v28 = vpop.f32.mrb[0].mxu0  ;;  %v336_v29 = vpop.f32.mrb[0].mxu1 }
  0xe8   :  { %v230_v30 = vmax.f32 %v324_v28, 0.0  ;;  %v238_v31 = vmax.f32 %v336_v29, 0.0  ;;  %v150_v32 = vpop.f32.mrb[1].mxu0  ;;  %v190_v33 = vpop.f32.mrb[1].mxu1 }
  0xe9   :  { %v229_v34 = vmax.f32 %v150_v32, 0.0  ;;  %v237_v35 = vmax.f32 %v190_v33, 0.0 }
  0xea   :  { %247 = vst.msk [vmem:[%s539_s2 + $0x8] sm:$0xff] %vm245_vm1, %v230_v30  ;;  %255 = vst.msk [vmem:[%s539_s2 + $0x48] sm:$0xff] %vm245_vm1, %v238_v31 }
  0xeb   :  { %246 = vst.msk [vmem:[%s539_s2] sm:$0xff] %vm245_vm1, %v229_v34  ;;  %254 = vst.msk [vmem:[%s539_s2 + $0x40] sm:$0xff] %vm245_vm1, %v237_v35  ;;  %v327_v36 = vpop.f32.mrb[2].mxu0  ;;  %v339_v37 = vpop.f32.mrb[2].mxu1 }
  0xec   :  { %v232_v38 = vmax.f32 %v327_v36, 0.0  ;;  %v240_v39 = vmax.f32 %v339_v37, 0.0  ;;  %v160_v40 = vpop.f32.mrb[3].mxu0  ;;  %v200_v41 = vpop.f32.mrb[3].mxu1 }
  0xed   :  { %v231_v42 = vmax.f32 %v160_v40, 0.0  ;;  %v239_v43 = vmax.f32 %v200_v41, 0.0 }
  0xee   :  { %249 = vst.msk [vmem:[%s539_s2 + $0x18] sm:$0xff] %vm245_vm1, %v232_v38  ;;  %257 = vst.msk [vmem:[%s539_s2 + $0x58] sm:$0xff] %vm245_vm1, %v240_v39 }
  0xef   :  { %248 = vst.msk [vmem:[%s539_s2 + $0x10] sm:$0xff] %vm245_vm1, %v231_v42  ;;  %256 = vst.msk [vmem:[%s539_s2 + $0x50] sm:$0xff] %vm245_vm1, %v239_v43  ;;  %v330_v44 = vpop.f32.mrb[4].mxu0  ;;  %v342_v45 = vpop.f32.mrb[4].mxu1 }
  0xf0   :  { %v234_v46 = vmax.f32 %v330_v44, 0.0  ;;  %v242_v47 = vmax.f32 %v342_v45, 0.0  ;;  %v170_v48 = vpop.f32.mrb[5].mxu0  ;;  %v210_v49 = vpop.f32.mrb[5].mxu1 }
  0xf1   :  { %v233_v50 = vmax.f32 %v170_v48, 0.0  ;;  %v241_v51 = vmax.f32 %v210_v49, 0.0 }
  0xf2   :  { %251 = vst.msk [vmem:[%s539_s2 + $0x28] sm:$0xff] %vm245_vm1, %v234_v46  ;;  %259 = vst.msk [vmem:[%s539_s2 + $0x68] sm:$0xff] %vm245_vm1, %v242_v47 }
  0xf3   :  { %250 = vst.msk [vmem:[%s539_s2 + $0x20] sm:$0xff] %vm245_vm1, %v233_v50  ;;  %258 = vst.msk [vmem:[%s539_s2 + $0x60] sm:$0xff] %vm245_vm1, %v241_v51  ;;  %v333_v52 = vpop.f32.mrb[6].mxu0  ;;  %v345_v53 = vpop.f32.mrb[6].mxu1 }
  0xf4   :  { %v236_v54 = vmax.f32 %v333_v52, 0.0  ;;  %v244_v55 = vmax.f32 %v345_v53, 0.0  ;;  %v180_v56 = vpop.f32.mrb[7].mxu0  ;;  %v220_v57 = vpop.f32.mrb[7].mxu1 }
  0xf5   :  { %v235_v58 = vmax.f32 %v180_v56, 0.0  ;;  %v243_v59 = vmax.f32 %v220_v57, 0.0 }
  0xf6   :  { %253 = vst.msk [vmem:[%s539_s2 + $0x38] sm:$0xff] %vm245_vm1, %v236_v54  ;;  %261 = vst.msk [vmem:[%s539_s2 + $0x78] sm:$0xff] %vm245_vm1, %v244_v55 }
  0xf7   :  { %252 = vst.msk [vmem:[%s539_s2 + $0x30] sm:$0xff] %vm245_vm1, %v235_v58  ;;  %260 = vst.msk [vmem:[%s539_s2 + $0x70] sm:$0xff] %vm245_vm1, %v243_v59 }

// kernel: unet_innermost_forward.3
= control target key start
LH: loop header
LB: loop body
LE: loop exit
PB: predicated region body
PF: predicated region fallthrough
CT: control target
= control target key end

     0   :  { %s739_s9 = smov 0   ;;  %s810_s0 = inlined_call_operand.vmem [shape: f32[2,4,32,64], index: 0, kind: input, shape index: {}]   ;;  %s811_s1 = inlined_call_operand.vmem [shape: f32[4,4,32], index: 1, kind: input, shape index: {}]   ;;  %s812_s2 = inlined_call_operand.vmem [shape: f32[2,4,4,64], index: 2, kind: output, shape index: {}]  }
   0x1 LB: > { %s577_s10 = sadd.s32 4294967295, %s719_s9   ;;  %p581_p0 = scmp.ge.s32.totalorder %s719_s9, 1  ;;  %s719_s9 = sphi %s739_s9, %s12_s9  }
   0x2   : > { %p112_p1 = scmp.lt.s32.totalorder %s719_s9, 3 }
   0x4   : > { %p113_p2 = pnand %p581_p0, %p112_p1 }
   0x5   : > { %p134_p3 = scmp.lt.s32.totalorder (!%p113_p2), %s577_s10, 1  ;;  %v721_v0 = vmov (!%p113_p2), 0.0|0.0   ;;  %vm722_vm0 = vmmov (!%p113_p2), 0   ;;  %v723_v1 = vmov (!%p113_p2), 0.0   ;;  %v144_v18 = vld [vmem:[%s811_s1] sm:$0xf] (!%p113_p2) }
   0x6   : > { %116 = sbr.rel (%p113_p2) target bundleno = 420 (0x1a4), region = 28  ;;  %676 = vmatprep.subr.bf16.mxu0 (!%p113_p2), %v721_v0  ;;  %682 = vmatprep.subr.bf16.mxu1 (!%p113_p2), %v721_v0  ;;  %vm149_vm1 = vcmask (!%p113_p2), 261120   ;;  %v587_v20 = vld [vmem:[%s811_s1 + $0x4] sm:$0xf] (!%p113_p2)  ;;  %v593_v28 = vld [vmem:[%s811_s1 + $0x8] sm:$0xf] (!%p113_p2) }
   0x7   : > { %640 = vmatprep.mubr.msk.f32.mxu0 (!%p113_p2), %vm722_vm0, %v723_v1  ;;  %651 = vmatprep.mubr.msk.f32.mxu1 (!%p113_p2), %vm722_vm0, %v723_v1  ;;  %v599_v29 = vld [vmem:[%s811_s1 + $0xc] sm:$0xf] (!%p113_p2)  ;;  %vm223_vm2 = vcmask (!%p113_p2), 519168  }
   0xd   : > { %s814_s10 = smov (!%p134_p3, %s577_s10), 1 }
   0xe   : > { %s610_s11 = sshll.u32 %s814_s10, 7  ;;  %s611_s23 = sshll.u32 %s814_s10, 4 }
   0xf   : > { %s755_s14 = scalar_lea.vmem %s810_s0, %s610_s11  ;;  %s143_s26 = scalar_lea.vmem %s812_s2, %s611_s23 }
  0x10   : > { %v145_v2 = vld [vmem:[%s755_s14] sm:$0xff]  ;;  %v146_v3 = vld [vmem:[%s755_s14 + $0x8] sm:$0xff]  ;;  %v147_v7 = vld [vmem:[%s755_s14 + $0x10] sm:$0xff] }
  0x11   : > { %v588_v4 = vld [vmem:[%s755_s14 + $0x20] sm:$0xff]  ;;  %v677_v5 = vpack.c.bf16 %v146_v3, %v145_v2  ;;  %v589_v6 = vld [vmem:[%s755_s14 + $0x28] sm:$0xff]  ;;  %v148_v8 = vld [vmem:[%s755_s14 + $0x18] sm:$0xff] }
  0x12   : > { %v683_v9 = vpack.c.bf16 %v589_v6, %v588_v4  ;;  %v590_v10 = vld [vmem:[%s755_s14 + $0x30] sm:$0xff]  ;;  %v591_v11 = vld [vmem:[%s755_s14 + $0x38] sm:$0xff]  ;;  %v680_v12 = vpack.c.bf16 %v148_v8, %v147_v7  ;;  %v594_v14 = vld [vmem:[%s755_s14 + $0x40] sm:$0xff] }
  0x13   : > { %678 = vmatpush3.bf16.msra.mxu0 %v677_v5  ;;  %v686_v13 = vpack.c.bf16 %v591_v11, %v590_v10  ;;  %v595_v15 = vld [vmem:[%s755_s14 + $0x48] sm:$0xff]  ;;  %v600_v16 = vld [vmem:[%s755_s14 + $0x60] sm:$0xff]  ;;  %v596_v22 = vld [vmem:[%s755_s14 + $0x50] sm:$0xff] }
  0x14   : > { %679 = vmatprep.subr.bf16.mxu0 %v721_v0  ;;  %684 = vmatpush3.bf16.msra.mxu1 %v683_v9  ;;  %v601_v17 = vld [vmem:[%s755_s14 + $0x68] sm:$0xff]  ;;  %v689_v19 = vpack.c.bf16 %v595_v15, %v594_v14  ;;  %v597_v23 = vld [vmem:[%s755_s14 + $0x58] sm:$0xff]  ;;  %v602_v24 = vld [vmem:[%s755_s14 + $0x70] sm:$0xff] }
  0x15   : > { %685 = vmatprep.subr.bf16.mxu1 %v721_v0  ;;  %v695_v21 = vpack.c.bf16 %v601_v17, %v600_v16  ;;  %v603_v25 = vld [vmem:[%s755_s14 + $0x78] sm:$0xff]  ;;  %v692_v26 = vpack.c.bf16 %v597_v23, %v596_v22 }
  0x16   : > { %v698_v27 = vpack.c.bf16 %v603_v25, %v602_v24 }
  0x17   : > { %681 = vmatpush3.bf16.msra.mxu0 %v680_v12 }
  0x18   : > { %687 = vmatpush3.bf16.msra.mxu1 %v686_v13  ;;  %688 = vmatprep.subr.bf16.mxu0 %v721_v0 }
  0x19   : > { %694 = vmatprep.subr.bf16.mxu1 %v721_v0 }
  0x1a   : > { %641 = vmatmul.mubr.msk.f32.vlgmr.msra.gmra.mrb[0].mxu0 %vm149_vm1, %v144_v18 }
  0x1b   : > { %690 = vmatpush3.bf16.msra.mxu0 %v689_v19  ;;  %652 = vmatmul.mubr.msk.f32.vlgmr.msra.gmra.mrb[0].mxu1 %vm149_vm1, %v587_v20 }
  0x1c   : > { %691 = vmatprep.subr.bf16.mxu0 %v721_v0  ;;  %696 = vmatpush3.bf16.msra.mxu1 %v695_v21 }
  0x1d   : > { %662 = vmatprep.mubr.msk.f32.mxu0 %vm722_vm0, %v723_v1  ;;  %697 = vmatprep.subr.bf16.mxu1 %v721_v0 }
  0x1e   : > { %673 = vmatprep.mubr.msk.f32.mxu1 %vm722_vm0, %v723_v1 }
  0x1f   : > { %693 = vmatpush3.bf16.msra.mxu0 %v692_v26 }
  0x20   : > { %699 = vmatpush3.bf16.msra.mxu1 %v698_v27 }
  0x22   : > { %663 = vmatmul.mubr.msk.f32.vlgmr.msra.gmra.mrb[2].mxu0 %vm149_vm1, %v593_v28 }
  0x23   : > { %674 = vmatmul.mubr.msk.f32.vlgmr.msra.gmra.mrb[2].mxu1 %vm149_vm1, %v599_v29 }
  0xed   : > { %v219_v30 = vpop.f32.mrb[0].mxu0 }
  0xee   : > { %v642_v31 = vpop.f32.mrb[1].mxu0  ;;  %v224_v32 = vsel %vm223_vm2, %v219_v30, 0.0  ;;  %v309_v33 = vpop.f32.mrb[0].mxu1  ;;  %v228_v34 = vmul.f32 %v219_v30, %v219_v30 }
  0xef   : > { %225 = vadd.xlane.f32.xlu0 %v224_v32  ;;  %v653_v35 = vpop.f32.mrb[1].mxu1  ;;  %v317_v36 = vmul.f32 %v309_v33, %v309_v33  ;;  %v313_v38 = vsel %vm223_vm2, %v309_v33, 0.0 }
  0xf0   : > { %v229_v37 = vsel %vm223_vm2, %v228_v34, 0.0 }
  0xf1   : > { %230 = vadd.xlane.f32.xlu1 %v229_v37  ;;  %v318_v39 = vsel %vm223_vm2, %v317_v36, 0.0 }
  0xf3   : > { %314 = vadd.xlane.f32.xlu0 %v313_v38 }
  0xf5   : > { %319 = vadd.xlane.f32.xlu1 %v318_v39  ;;  %v398_v40 = vpop.f32.mrb[2].mxu0 }
  0xf6   : > { %v664_v41 = vpop.f32.mrb[3].mxu0  ;;  %v402_v42 = vsel %vm223_vm2, %v398_v40, 0.0  ;;  %v487_v43 = vpop.f32.mrb[2].mxu1  ;;  %v406_v44 = vmul.f32 %v398_v40, %v398_v40 }
  0xf7   : > { %403 = vadd.xlane.f32.xlu0 %v402_v42  ;;  %v675_v45 = vpop.f32.mrb[3].mxu1  ;;  %v495_v46 = vmul.f32 %v487_v43, %v487_v43  ;;  %v491_v48 = vsel %vm223_vm2, %v487_v43, 0.0 }
  0xf8   : > { %v407_v47 = vsel %vm223_vm2, %v406_v44, 0.0 }
  0xf9   : > { %408 = vadd.xlane.f32.xlu1 %v407_v47  ;;  %v496_v49 = vsel %vm223_vm2, %v495_v46, 0.0 }
  0xfb   : > { %492 = vadd.xlane.f32.xlu0 %v491_v48 }
  0xfd   : > { %497 = vadd.xlane.f32.xlu1 %v496_v49 }
 0x17c   : > { %v226_v50 = vpop.xlane.xlu0 %225 }
 0x17e   : > { %v231_v51 = vpop.xlane.xlu1 %230 }
 0x180   : > { %v315_v52 = vpop.xlane.xlu0 %314 }
 0x181   : > { %v316_v55 = vadd.f32 %v315_v52, %v226_v50 }
 0x182   : > { %v320_v53 = vpop.xlane.xlu1 %319 }
 0x183   : > { %v321_v57 = vadd.f32 %v320_v53, %v231_v51 }
 0x184   : > { %v404_v54 = vpop.xlane.xlu0 %403 }
 0x185   : > { %v405_v58 = vadd.f32 %v404_v54, %v316_v55 }
 0x186   : > { %v409_v56 = vpop.xlane.xlu1 %408 }
 0x187   : > { %v410_v60 = vadd.f32 %v409_v56, %v321_v57 }
 0x188   : > { %v493_v59 = vpop.xlane.xlu0 %492 }
 0x189   : > { %v494_v61 = vadd.f32 %v493_v59, %v405_v58 }
 0x18a   : > { %v498_v62 = vpop.xlane.xlu1 %497 }
 0x18b   : > { %v500_v63 = vmul.f32 0.00390625, %v494_v61  ;;  %v499_v0 = vadd.f32 %v498_v62, %v410_v60 }
 0x18d   : > { %v501_v1 = vmul.f32 0.00390625, %v499_v0  ;;  %v502_v2 = vmul.f32 %v500_v63, %v500_v63  ;;  %v507_v6 = vsub.f32 %v219_v30, %v500_v63  ;;  %v510_v7 = vsub.f32 %v309_v33, %v500_v63 }
 0x18e   : > { %v514_v8 = vsub.f32 %v398_v40, %v500_v63  ;;  %v518_v9 = vsub.f32 %v487_v43, %v500_v63 }
 0x18f   : > { %v503_v3 = vsub.f32 %v501_v1, %v502_v2 }
 0x191   : > { %v504_v4 = vmax.f32 %v503_v3, 0.0 }
 0x193   : > { %v505_v5 = vadd.f32 1e-05, %v504_v4 }
 0x195   : > { %711 = vrsqrt.f32 %v505_v5 }
 0x19f   : > { %v712_v10 = vpop.eup %711 }
 0x1a0   : > { %v508_v11 = vmul.f32 %v712_v10, %v507_v6  ;;  %v511_v12 = vmul.f32 %v712_v10, %v510_v7  ;;  %v515_v13 = vmul.f32 %v712_v10, %v514_v8  ;;  %v519_v14 = vmul.f32 %v712_v10, %v518_v9 }
 0x1a2   : > { %509 = vst.msk [vmem:[%s143_s26] sm:$0xf] %vm223_vm2, %v508_v11  ;;  %605 = vst.msk [vmem:[%s143_s26 + $0x4] sm:$0xf] %vm223_vm2, %v511_v12 }
 0x1a3   : > { %606 = vst.msk [vmem:[%s143_s26 + $0x8] sm:$0xf] %vm223_vm2, %v515_v13  ;;  %607 = vst.msk [vmem:[%s143_s26 + $0xc] sm:$0xf] %vm223_vm2, %v519_v14 }
 0x1a4 PF: > { %s12_s9 = sadd.s32 1, %s719_s9  }
 0x1a5   : > { %p9_p4 = scmp.ge.s32.totalorder %s12_s9, 4  }
 0x1a7   :  { %11 = sbr.rel (!%p9_p4) target bundleno = 1 (0x1), region = 67 }

</bundles_post_ra>
